<compile_context>
chip_gen: v5e
topology: v5e:2x2
jax: 0.10.0
libtpu: 0.0.40
codegen_flags: <defaults>
</compile_context>

<pallas_src>
import functools

import jax
import jax.numpy as jnp
from jax.experimental import pallas as pl
from jax.experimental.pallas import tpu as pltpu

_EPS = 1e-5  # PyTorch nn.LayerNorm default


def _channel_ln_kernel(x_ref, g_ref, b_ref, o_ref):
    # x_ref: (tb, C, tile_hw) — normalize each (batch row, spatial lane) over C.
    x = x_ref[...].astype(jnp.float32)
    mean = jnp.mean(x, axis=1, keepdims=True)                # (tb, 1, tile_hw)
    centered = x - mean
    var = jnp.mean(centered * centered, axis=1, keepdims=True)
    inv = jax.lax.rsqrt(var + _EPS)
    gamma = g_ref[...].astype(jnp.float32)                   # (1, C, 1)
    beta = b_ref[...].astype(jnp.float32)                    # (1, C, 1)
    o_ref[...] = (centered * inv * gamma + beta).astype(o_ref.dtype)


def _round_up(x, m):
    return -(-x // m) * m


def _cdiv(a, b):
    return -(-a // b)


def _sublane_pack(itemsize):
    # 32-bit dtypes pack 8 rows per vreg sublane group, bf16 packs 16, int8 32.
    return max(8, 32 // max(1, itemsize))


def _pick_blocking(B, C, HW, itemsize, max_tile_bytes):
    """Choose (tb, tile_hw) so one padded x block stays <= max_tile_bytes."""
    pack = _sublane_pack(itemsize)
    c_pad = _round_up(C, pack)
    hw_pad = _round_up(HW, 128)
    row_bytes = c_pad * itemsize                  # one lane column, padded C
    per_batch_bytes = row_bytes * hw_pad

    if per_batch_bytes <= max_tile_bytes:
        # Full spatial extent fits in one block; pack multiple batch rows per
        # block so the per-step grid overhead is amortized and DMAs are large.
        tb = max(1, min(B, max_tile_bytes // per_batch_bytes))
        tile_hw = HW
    else:
        tb = 1
        lanes = (max_tile_bytes // row_bytes) // 128 * 128
        lanes = max(512, lanes)                   # >=512 lanes for DMA/roofline
        lanes = min(lanes, hw_pad)
        tile_hw = lanes
        # Prefer a tile that divides HW (unmasked lane-dense stores, no ragged
        # tail), as long as it stays within ~2x of the lane budget.
        lo = max(512, lanes // 2)
        for cand in range(lanes, lo - 1, -128):
            if HW % cand == 0:
                tile_hw = cand
                break

    # Guarantee >=2 grid steps when there is real data so both v7x TensorCores
    # get work (harmless on single-TC v5e/v6e; skipped for tiny problems where
    # the per-step overhead would dominate).
    steps = _cdiv(B, tb) * _cdiv(HW, tile_hw)
    total_bytes = B * per_batch_bytes
    if steps == 1 and total_bytes >= (1 << 20):
        if B >= 2:
            tb = _cdiv(B, 2)
        elif HW >= 256:
            tile_hw = min(tile_hw, _round_up(_cdiv(HW, 2), 128))

    return tb, tile_hw


def _vmem_limit_bytes(tb, C, tile_hw, itemsize):
    pack = _sublane_pack(itemsize)
    block_bytes = tb * _round_up(C, pack) * _round_up(tile_hw, 128) * itemsize
    # Input + output blocks, each double-buffered (4x), plus gamma/beta and
    # compiler scratch slack. Never below the known-safe 16 MiB scoped default.
    need = 4 * block_bytes + (2 << 20)
    return max(need, 16 << 20)


@functools.partial(jax.jit, static_argnames=("max_tile_bytes",))
def channel_layernorm(x_nchw, gamma, beta, *, max_tile_bytes=8 * 1024 * 1024):
    """LayerNorm over channels of an NCHW tensor (PyTorch Channel_Layernorm)."""
    B, C, H, W = x_nchw.shape
    HW = H * W
    itemsize = x_nchw.dtype.itemsize

    # Free, layout-preserving views (no HBM traffic).
    x3d = x_nchw.reshape(B, C, HW)
    gamma3d = gamma.reshape(1, C, 1)
    beta3d = beta.reshape(1, C, 1)

    tb, tile_hw = _pick_blocking(B, C, HW, itemsize, max_tile_bytes)
    grid = (_cdiv(B, tb), _cdiv(HW, tile_hw))  # ragged tails clipped by Pallas

    cost = pl.CostEstimate(
        flops=7 * B * C * HW,
        transcendentals=B * HW,
        bytes_accessed=2 * B * C * HW * itemsize,
    )

    out3d = pl.pallas_call(
        _channel_ln_kernel,
        out_shape=jax.ShapeDtypeStruct((B, C, HW), x_nchw.dtype),
        grid_spec=pltpu.PrefetchScalarGridSpec(
            num_scalar_prefetch=0,
            grid=grid,
            in_specs=[
                pl.BlockSpec((tb, C, tile_hw), lambda b, t: (b, 0, t)),
                # gamma/beta: same block every step -> stay resident in VMEM.
                pl.BlockSpec((1, C, 1), lambda b, t: (0, 0, 0)),
                pl.BlockSpec((1, C, 1), lambda b, t: (0, 0, 0)),
            ],
            out_specs=pl.BlockSpec((tb, C, tile_hw), lambda b, t: (b, 0, t)),
        ),
        compiler_params=pltpu.CompilerParams(
            dimension_semantics=("parallel", "parallel"),
            vmem_limit_bytes=_vmem_limit_bytes(tb, C, tile_hw, itemsize),
        ),
        cost_estimate=cost,
    )(x3d, gamma3d, beta3d)

    return out3d.reshape(B, C, H, W)


def _reference_channel_layernorm(x_nchw, gamma, beta):
    x = jnp.transpose(x_nchw, (0, 2, 3, 1)).astype(jnp.float32)
    mean = jnp.mean(x, axis=-1, keepdims=True)
    var = jnp.mean((x - mean) ** 2, axis=-1, keepdims=True)
    y = (x - mean) / jnp.sqrt(var + _EPS) * gamma + beta
    return jnp.transpose(y, (0, 3, 1, 2)).astype(x_nchw.dtype)


if __name__ == "__main__":
    key = jax.random.PRNGKey(0)

    # Case 1: the canonical small NCHW shape (dim = C = 4).
    B, C, H, W = 2, 4, 16, 16
    k1, k2 = jax.random.split(key)
    x = jax.random.normal(k1, (B, C, H, W), dtype=jnp.float32)
    # nn.LayerNorm default init: weight = ones, bias = zeros (deterministic).
    gamma = jnp.ones((C,), dtype=jnp.float32)
    beta = jnp.zeros((C,), dtype=jnp.float32)

    out = jax.block_until_ready(channel_layernorm(x, gamma, beta))
    ref = _reference_channel_layernorm(x, gamma, beta)
    assert out.shape == (B, C, H, W)
    assert jnp.allclose(out, ref, atol=1e-5, rtol=1e-5)

    # Case 2: odd sizes (C not a multiple of 8, H*W not a multiple of 128,
    # ragged batch packing) to exercise the full-extent / packed-batch path.
    B2, C2, H2, W2 = 3, 6, 14, 14
    x2 = jax.random.normal(k2, (B2, C2, H2, W2), dtype=jnp.float32)
    gamma2 = jnp.ones((C2,), dtype=jnp.float32)
    beta2 = jnp.zeros((C2,), dtype=jnp.float32)

    out2 = jax.block_until_ready(channel_layernorm(x2, gamma2, beta2))
    ref2 = _reference_channel_layernorm(x2, gamma2, beta2)
    assert out2.shape == (B2, C2, H2, W2)
    assert jnp.allclose(out2, ref2, atol=1e-5, rtol=1e-5)

    print("KERNEL_OK")
</pallas_src>

<mosaic_0001>
module attributes {stable_mosaic.version = 11 : i64} {
  func.func @_channel_ln_kernel(%arg0: i32, %arg1: i32, %arg2: memref<2x4x256xf32, #tpu.memory_space<vmem>>, %arg3: memref<1x4x1xf32, #tpu.memory_space<vmem>>, %arg4: memref<1x4x1xf32, #tpu.memory_space<vmem>>, %arg5: memref<2x4x256xf32, #tpu.memory_space<vmem>>) attributes {dimension_semantics = [#tpu.dimension_semantics<parallel>, #tpu.dimension_semantics<parallel>], iteration_bounds = array<i64: 1, 1>, scalar_prefetch = 0 : i64, scratch_operands = 0 : i64, tpu.core_type = #tpu.core_type<tc>, window_params = [{transform_indices = @transform_0, window_bounds = array<i64: 2, 4, 256>}, {pipeline_mode = #tpu.pipeline_mode<synchronous>, transform_indices = @transform_1, window_bounds = array<i64: 1, 4, 1>}, {pipeline_mode = #tpu.pipeline_mode<synchronous>, transform_indices = @transform_2, window_bounds = array<i64: 1, 4, 1>}, {transform_indices = @transform_3, window_bounds = array<i64: 2, 4, 256>}]} {
    %c0 = arith.constant 0 : index
    %c0_0 = arith.constant 0 : index
    %c0_1 = arith.constant 0 : index
    %0 = vector.load %arg2[%c0, %c0_0, %c0_1] : memref<2x4x256xf32, #tpu.memory_space<vmem>>, vector<2x4x256xf32>
    %cst = arith.constant dense<0.000000e+00> : vector<2x256xf32>
    %1 = vector.multi_reduction <add>, %0, %cst [1] : vector<2x4x256xf32> to vector<2x256xf32>
    %2 = vector.shape_cast %1 : vector<2x256xf32> to vector<2x1x256xf32>
    %cst_2 = arith.constant 4.000000e+00 : f32
    %3 = vector.broadcast %cst_2 : f32 to vector<2x1x256xf32>
    %4 = arith.divf %2, %3 : vector<2x1x256xf32>
    %5 = vector.broadcast %4 : vector<2x1x256xf32> to vector<2x4x256xf32>
    %6 = arith.subf %0, %5 : vector<2x4x256xf32>
    %7 = arith.mulf %6, %6 : vector<2x4x256xf32>
    %cst_3 = arith.constant dense<0.000000e+00> : vector<2x256xf32>
    %8 = vector.multi_reduction <add>, %7, %cst_3 [1] : vector<2x4x256xf32> to vector<2x256xf32>
    %9 = vector.shape_cast %8 : vector<2x256xf32> to vector<2x1x256xf32>
    %cst_4 = arith.constant 4.000000e+00 : f32
    %10 = vector.broadcast %cst_4 : f32 to vector<2x1x256xf32>
    %11 = arith.divf %9, %10 : vector<2x1x256xf32>
    %cst_5 = arith.constant 9.99999974E-6 : f32
    %12 = vector.broadcast %cst_5 : f32 to vector<2x1x256xf32>
    %13 = arith.addf %11, %12 : vector<2x1x256xf32>
    %14 = math.rsqrt %13 : vector<2x1x256xf32>
    %c0_6 = arith.constant 0 : index
    %c0_7 = arith.constant 0 : index
    %c0_8 = arith.constant 0 : index
    %15 = vector.load %arg3[%c0_6, %c0_7, %c0_8] : memref<1x4x1xf32, #tpu.memory_space<vmem>>, vector<1x4x1xf32>
    %c0_9 = arith.constant 0 : index
    %c0_10 = arith.constant 0 : index
    %c0_11 = arith.constant 0 : index
    %16 = vector.load %arg4[%c0_9, %c0_10, %c0_11] : memref<1x4x1xf32, #tpu.memory_space<vmem>>, vector<1x4x1xf32>
    %17 = vector.broadcast %14 : vector<2x1x256xf32> to vector<2x4x256xf32>
    %18 = arith.mulf %6, %17 : vector<2x4x256xf32>
    %19 = vector.broadcast %15 : vector<1x4x1xf32> to vector<2x4x256xf32>
    %20 = arith.mulf %18, %19 : vector<2x4x256xf32>
    %21 = vector.broadcast %16 : vector<1x4x1xf32> to vector<2x4x256xf32>
    %22 = arith.addf %20, %21 : vector<2x4x256xf32>
    %c0_12 = arith.constant 0 : index
    %c0_13 = arith.constant 0 : index
    %c0_14 = arith.constant 0 : index
    %23 = vector.load %arg5[%c0_12, %c0_13, %c0_14] : memref<2x4x256xf32, #tpu.memory_space<vmem>>, vector<2x4x256xf32>
    tpu.vector_store %arg5[%c0_12, %c0_13, %c0_14], %22 {strides = array<i32>} : memref<2x4x256xf32, #tpu.memory_space<vmem>>, vector<2x4x256xf32>,
    return
  }
  func.func @transform_0(%arg0: i32, %arg1: i32) -> (i32, i32, i32) {
    %c0_i32 = arith.constant 0 : i32
    %c0_i32_0 = arith.constant 0 : i32
    return %arg0, %c0_i32, %arg1 : i32, i32, i32
  }
  func.func @transform_1(%arg0: i32, %arg1: i32) -> (i32, i32, i32) {
    %c0_i32 = arith.constant 0 : i32
    %c0_i32_0 = arith.constant 0 : i32
    %c0_i32_1 = arith.constant 0 : i32
    %c0_i32_2 = arith.constant 0 : i32
    return %c0_i32, %c0_i32_0, %c0_i32_1 : i32, i32, i32
  }
  func.func @transform_2(%arg0: i32, %arg1: i32) -> (i32, i32, i32) {
    %c0_i32 = arith.constant 0 : i32
    %c0_i32_0 = arith.constant 0 : i32
    %c0_i32_1 = arith.constant 0 : i32
    %c0_i32_2 = arith.constant 0 : i32
    return %c0_i32, %c0_i32_0, %c0_i32_1 : i32, i32, i32
  }
  func.func @transform_3(%arg0: i32, %arg1: i32) -> (i32, i32, i32) {
    %c0_i32 = arith.constant 0 : i32
    %c0_i32_0 = arith.constant 0 : i32
    return %arg0, %c0_i32, %arg1 : i32, i32, i32
  }
}

</mosaic_0001>

<bundles_post_ra>
// kernel: channel_layernorm.1
= control target key start
LH: loop header
LB: loop body
LE: loop exit
PB: predicated region body
PF: predicated region fallthrough
CT: control target
= control target key end

     0   :  { %v228_v0 = vmov 0   ;;  %v229_v2 = vmov 4.0   ;;  %vm29_vm0 = vcmask 1043456   ;;  %s297_s1 = inlined_call_operand.vmem [shape: f32[1,4,1], index: 1, kind: input, shape index: {}]   ;;  %s298_s2 = inlined_call_operand.vmem [shape: f32[1,4,1], index: 2, kind: input, shape index: {}]   ;;  %s299_s0 = inlined_call_operand.vmem [shape: f32[2,4,256], index: 0, kind: input, shape index: {}]   ;;  %s300_s3 = inlined_call_operand.vmem [shape: f32[2,4,256], index: 3, kind: output, shape index: {}]  }
   0x1   :  { %217 = vset.pattern.permute.xlu0 %v228_v0  ;;  %v172_v1 = vld [vmem:[%s297_s1] sm:$0xf]  ;;  %218 = vrcp.f32 %v229_v2  ;;  %v15_v5 = vld [vmem:[%s299_s0 + $0x8] sm:$0xff] }
   0x2   :  { %188 = vperm.xlu0 %217, %v172_v1   ;;  %v173_v3 = vld [vmem:[%s298_s2] sm:$0xf]  ;;  %22 = vst [vmem:[#allocation1 + $0x10] ss:$2 sm:$0xff] %v15_v5 }
   0x3   :  { %v14_v4 = vld [vmem:[%s299_s0] sm:$0xff] }
   0x4   :  { %18 = vst [vmem:[#allocation1] ss:$2 sm:$0xff] %v14_v4 }
   0x7   :  { %v219_v6 = vpop.eup %218 }
   0x8   :  { %v59_v7 = vmul.f32 4.0, %v219_v6  ;;  %vm63_vm1 = vweird.f32 %v219_v6 }
   0x9   :  { %v24_v10 = vld.sshfl [vmem:[#allocation1 + $0x18] sm:$0xff pattern:$0x75316420]  ;;  %v23_v13 = vld.sshfl [vmem:[#allocation1 + $0x10] sm:$0xff pattern:$0x75316420] }
   0xa   :  { %199 = vperm.xlu0 %217, %v173_v3   ;;  %v60_v8 = vsub.f32 1.0, %v59_v7  ;;  %v44_v16 = vsel %vm29_vm0, %v23_v13, 0.0  ;;  %v51_v17 = vsel %vm29_vm0, %v24_v10, 0.0 }
   0xb   :  { %v20_v9 = vld.sshfl [vmem:[#allocation1 + $0x8] sm:$0xff pattern:$0x75316420]  ;;  %v19_v12 = vld.sshfl [vmem:[#allocation1] sm:$0xff pattern:$0x75316420] }
   0xc   :  { %v37_v11 = vsel %vm29_vm0, %v20_v9, 0.0  ;;  %v30_v14 = vsel %vm29_vm0, %v19_v12, 0.0  ;;  %v61_v18 = vmul.f32 %v219_v6, %v60_v8  ;;  %v45_v20 = vrot.slane %v44_v16, 4 }
   0xd   :  { %v38_v15 = vrot.slane %v37_v11, 4  ;;  %v31_v19 = vrot.slane %v30_v14, 4  ;;  %v52_v21 = vrot.slane %v51_v17, 4 }
   0xe   :  { %v46_v24 = vadd.f32 %v45_v20, %v44_v16  ;;  %v62_v27 = vadd.f32 %v219_v6, %v61_v18 }
   0xf   :  { %v39_v22 = vadd.f32 %v38_v15, %v37_v11  ;;  %v32_v23 = vadd.f32 %v31_v19, %v30_v14  ;;  %v53_v25 = vadd.f32 %v52_v21, %v51_v17 }
  0x10   :  { %v47_v29 = vrot.slane %v46_v24, 2  ;;  %v64_v36 = vsel %vm63_vm1, %v219_v6, %v62_v27 }
  0x11   :  { %v40_v26 = vrot.slane %v39_v22, 2  ;;  %v33_v28 = vrot.slane %v32_v23, 2  ;;  %v54_v30 = vrot.slane %v53_v25, 2 }
  0x12   :  { %v48_v33 = vadd.f32 %v47_v29, %v46_v24 }
  0x13   :  { %v41_v31 = vadd.f32 %v40_v26, %v39_v22  ;;  %v34_v32 = vadd.f32 %v33_v28, %v32_v23  ;;  %v55_v34 = vadd.f32 %v54_v30, %v53_v25 }
  0x14   :  { %v49_v38 = vrot.slane %v48_v33, 1 }
  0x15   :  { %v42_v35 = vrot.slane %v41_v31, 1  ;;  %v35_v37 = vrot.slane %v34_v32, 1  ;;  %v56_v39 = vrot.slane %v55_v34, 1 }
  0x16   :  { %v50_v42 = vadd.f32 %v49_v38, %v48_v33 }
  0x17   :  { %v43_v40 = vadd.f32 %v42_v35, %v41_v31  ;;  %v36_v41 = vadd.f32 %v35_v37, %v34_v32  ;;  %v57_v43 = vadd.f32 %v56_v39, %v55_v34 }
  0x18   :  { %v67_v46 = vmul.f32 %v64_v36, %v50_v42 }
  0x19   :  { %v66_v44 = vmul.f32 %v64_v36, %v43_v40  ;;  %v65_v45 = vmul.f32 %v64_v36, %v36_v41  ;;  %v68_v47 = vmul.f32 %v64_v36, %v57_v43 }
  0x1b   :  { %v73_v48 = vrot.slane %v66_v44, 4  ;;  %v74_v49 = vrot.slane %v68_v47, 4 }
  0x1d   :  { %v75_v50 = vsel %vm29_vm0, %v65_v45, %v73_v48  ;;  %v76_v51 = vsel %vm29_vm0, %v67_v46, %v74_v49 }
  0x1e   :  { %v269_v52 = vsub.f32 %v14_v4, %v75_v50  ;;  %v271_v53 = vsub.f32 %v15_v5, %v76_v51 }
  0x20   :  { %v81_v54 = vmul.f32 %v269_v52, %v269_v52  ;;  %v82_v55 = vmul.f32 %v271_v53, %v271_v53 }
  0x22   :  { %85 = vst [vmem:[#allocation1] ss:$2 sm:$0xff] %v81_v54 }
  0x23   :  { %89 = vst [vmem:[#allocation1 + $0x10] ss:$2 sm:$0xff] %v82_v55 }
  0x29   :  { %v87_v56 = vld.sshfl [vmem:[#allocation1 + $0x8] sm:$0xff pattern:$0x75316420]  ;;  %v86_v57 = vld.sshfl [vmem:[#allocation1] sm:$0xff pattern:$0x75316420] }
  0x2a   :  { %v90_v58 = vld.sshfl [vmem:[#allocation1 + $0x10] sm:$0xff pattern:$0x75316420]  ;;  %v91_v59 = vld.sshfl [vmem:[#allocation1 + $0x18] sm:$0xff pattern:$0x75316420] }
  0x2b   :  { %v96_v60 = vsel %vm29_vm0, %v86_v57, 0.0  ;;  %v103_v61 = vsel %vm29_vm0, %v87_v56, 0.0  ;;  %v110_v62 = vsel %vm29_vm0, %v90_v58, 0.0  ;;  %v117_v2 = vsel %vm29_vm0, %v91_v59, 0.0 }
  0x2c   :  { %v97_v63 = vrot.slane %v96_v60, 4  ;;  %v104_v0 = vrot.slane %v103_v61, 4  ;;  %v111_v1 = vrot.slane %v110_v62, 4  ;;  %v118_v3 = vrot.slane %v117_v2, 4 }
  0x2e   :  { %v98_v4 = vadd.f32 %v97_v63, %v96_v60  ;;  %v105_v5 = vadd.f32 %v104_v0, %v103_v61  ;;  %v112_v6 = vadd.f32 %v111_v1, %v110_v62  ;;  %v119_v7 = vadd.f32 %v118_v3, %v117_v2 }
  0x30   :  { %v99_v8 = vrot.slane %v98_v4, 2  ;;  %v106_v9 = vrot.slane %v105_v5, 2  ;;  %v113_v10 = vrot.slane %v112_v6, 2  ;;  %v120_v11 = vrot.slane %v119_v7, 2 }
  0x32   :  { %v100_v12 = vadd.f32 %v99_v8, %v98_v4  ;;  %v107_v13 = vadd.f32 %v106_v9, %v105_v5  ;;  %v114_v14 = vadd.f32 %v113_v10, %v112_v6  ;;  %v121_v15 = vadd.f32 %v120_v11, %v119_v7 }
  0x33   :  { %v230_v5 = vmov 839922192  }
  0x34   :  { %v101_v16 = vrot.slane %v100_v12, 1  ;;  %v108_v17 = vrot.slane %v107_v13, 1  ;;  %v115_v18 = vrot.slane %v114_v14, 1  ;;  %v122_v19 = vrot.slane %v121_v15, 1 }
  0x35   :  { %v191_v6 = vunpack.c.l.s4 %v230_v5 }
  0x36   :  { %v102_v20 = vadd.f32 %v101_v16, %v100_v12  ;;  %v109_v21 = vadd.f32 %v108_v17, %v107_v13  ;;  %v116_v22 = vadd.f32 %v115_v18, %v114_v14  ;;  %v123_v23 = vadd.f32 %v122_v19, %v121_v15 }
  0x37   :  { %v192_v8 = vunpack.c.0.s8 %v191_v6 }
  0x38   :  { %v124_v24 = vmul.f32 %v102_v20, %v64_v36  ;;  %v125_v25 = vmul.f32 %v109_v21, %v64_v36  ;;  %v126_v26 = vmul.f32 %v116_v22, %v64_v36  ;;  %v127_v27 = vmul.f32 %v123_v23, %v64_v36 }
  0x3a   :  { %v128_v28 = vadd.f32 1e-05, %v124_v24  ;;  %v129_v29 = vadd.f32 1e-05, %v125_v25  ;;  %v130_v30 = vadd.f32 1e-05, %v126_v26 }
  0x3b   :  { %v131_v31 = vadd.f32 1e-05, %v127_v27 }
  0x3c   :  { %220 = vrsqrt.f32 %v128_v28  ;;  %vm148_vm2 = vweird.f32 %v129_v29  ;;  %vm138_vm7 = vweird.f32 %v128_v28  ;;  %vm158_vm11 = vweird.f32 %v130_v30 }
  0x3d   :  { %222 = vrsqrt.f32 %v129_v29  ;;  %vm168_vm5 = vweird.f32 %v131_v31 }
  0x3e   :  { %224 = vrsqrt.f32 %v130_v30 }
  0x3f   :  { %226 = vrsqrt.f32 %v131_v31 }
  0x42   :  { %v221_v32 = vpop.eup %220 }
  0x43   :  { %v223_v33 = vpop.eup %222  ;;  %v133_v34 = vmul.f32 %v221_v32, %v128_v28  ;;  %vm139_vm8 = vweird.f32 %v221_v32 }
  0x44   :  { %v225_v35 = vpop.eup %224  ;;  %v143_v37 = vmul.f32 %v223_v33, %v129_v29  ;;  %vm149_vm3 = vweird.f32 %v223_v33  ;;  %vm140_vm10 = vmor %vm138_vm7, %vm139_vm8 }
  0x45   :  { %v227_v38 = vpop.eup %226  ;;  %v134_v39 = vmul.f32 %v221_v32, %v133_v34  ;;  %v153_v40 = vmul.f32 %v225_v35, %v130_v30  ;;  %vm281_vm4 = vmor %vm148_vm2, %vm149_vm3  ;;  %vm159_vm12 = vweird.f32 %v225_v35 }
  0x46   :  { %v144_v41 = vmul.f32 %v223_v33, %v143_v37  ;;  %v163_v42 = vmul.f32 %v227_v38, %v131_v31  ;;  %vm169_vm6 = vweird.f32 %v227_v38  ;;  %vm160_vm13 = vmor %vm158_vm11, %vm159_vm12 }
  0x47   :  { %v135_v43 = vmul.f32 0.5, %v134_v39  ;;  %v154_v36 = vmul.f32 %v225_v35, %v153_v40  ;;  %vm170_vm9 = vmor %vm168_vm5, %vm169_vm6 }
  0x48   :  { %v145_v44 = vmul.f32 0.5, %v144_v41  ;;  %v164_v45 = vmul.f32 %v227_v38, %v163_v42 }
  0x49   :  { %v136_v46 = vsub.f32 1.5, %v135_v43  ;;  %v155_v47 = vmul.f32 0.5, %v154_v36 }
  0x4a   :  { %v146_v48 = vsub.f32 1.5, %v145_v44  ;;  %v165_v50 = vmul.f32 0.5, %v164_v45 }
  0x4b   :  { %v137_v51 = vmul.f32 %v221_v32, %v136_v46  ;;  %v156_v54 = vsub.f32 1.5, %v155_v47 }
  0x4c   :  { %v147_v55 = vmul.f32 %v223_v33, %v146_v48  ;;  %v166_v56 = vsub.f32 1.5, %v165_v50 }
  0x4d   :  { %v157_v57 = vmul.f32 %v225_v35, %v156_v54  ;;  %v141_v58 = vsel %vm140_vm10, %v221_v32, %v137_v51 }
  0x4e   :  { %v151_v59 = vsel %vm281_vm4, %v223_v33, %v147_v55  ;;  %v167_v60 = vmul.f32 %v227_v38, %v166_v56 }
  0x4f   :  { %v178_v61 = vrot.slane %v151_v59, 4  ;;  %v161_v62 = vsel %vm160_vm13, %v225_v35, %v157_v57 }
  0x50   :  { %v171_v63 = vsel %vm170_vm9, %v227_v38, %v167_v60 }
  0x51   :  { %v179_v0 = vrot.slane %v171_v63, 4  ;;  %v180_v1 = vsel %vm29_vm0, %v141_v58, %v178_v61 }
  0x52   :  { %v184_v2 = vmul.f32 %v180_v1, %v269_v52 }
  0x53   :  { %v181_v3 = vsel %vm29_vm0, %v161_v62, %v179_v0 }
  0x54   :  { %v185_v4 = vmul.f32 %v181_v3, %v271_v53 }
  0x74   :  { %v189_v7 = vpop.permute.xlu0 %188 }
  0x75   :  { %v193_v9 = vperm.slane %v189_v7, %v192_v8 }
  0x77   :  { %v195_v11 = vmul.f32 %v193_v9, %v184_v2  ;;  %v196_v12 = vmul.f32 %v193_v9, %v185_v4 }
  0x7c   :  { %v200_v10 = vpop.permute.xlu0 %199 }
  0x7d   :  { %v204_v13 = vperm.slane %v200_v10, %v192_v8 }
  0x7f   :  { %v206_v14 = vadd.f32 %v204_v13, %v195_v11  ;;  %v207_v15 = vadd.f32 %v204_v13, %v196_v12 }
  0x81   :  { %208 = vst [vmem:[%s300_s3] sm:$0xff] %v206_v14 }
  0x82   :  { %209 = vst [vmem:[%s300_s3 + $0x8] sm:$0xff] %v207_v15 }

</bundles_post_ra>
